<compile_context>
chip_gen: v7x
topology: tpu7x:2x2x1
jax: 0.10.0
libtpu: 0.0.40
codegen_flags: <defaults>
</compile_context>

<pallas_src>
import functools

import jax
import jax.numpy as jnp
from jax.experimental import pallas as pl
from jax.experimental.pallas import tpu as pltpu

LANES = 128


def _round_up(x, m):
    return ((x + m - 1) // m) * m


def _cdiv(a, b):
    return -(-a // b)


def _tpu_generation():
    """Returns (is_v7x, per_core_vmem_capacity_bytes) with safe fallbacks."""
    kind = ""
    try:
        kind = (getattr(jax.devices()[0], "device_kind", "") or "").lower()
    except Exception:
        pass
    is_v7 = ("v7" in kind) or ("tpu7" in kind)
    vmem_cap = (64 << 20) if is_v7 else (128 << 20)
    try:
        info = pltpu.get_tpu_info()
        vmem_cap = int(getattr(info, "vmem_capacity_bytes", vmem_cap))
    except Exception:
        pass
    return is_v7, vmem_cap


def _mse_partial_kernel(o_ref, r_ref, part_ref, acc_ref, *, inv_n, sub_blocks):
    """Sum of (o - r)^2 over one partial's row range, accumulated over k.

    Grid invariant: axis 1 (k) is the innermost, sequential ("arbitrary")
    reduction axis, so each partial p finishes all its k steps before the next
    partial starts; the single (8, 128) accumulator scratch is therefore safe
    to reuse across partials. Do NOT reorder the grid to (K, P).
    """
    k = pl.program_id(1)

    @pl.when(k == 0)
    def _init():
        acc_ref[...] = jnp.zeros_like(acc_ref)

    d = o_ref[...].astype(jnp.float32) - r_ref[...].astype(jnp.float32)
    sq = d * d
    # Fold the (tile_rows, 128) block down to (8, 128): the reshape keeps the
    # (8, 128) f32 vreg tiles intact and the sum over the leading axis lowers
    # to a chain of elementwise vreg adds — pure VPU, no cross-lane/XLU work.
    acc_ref[...] += sq.reshape(sub_blocks, 8, LANES).sum(axis=0)

    @pl.when(k == pl.num_programs(1) - 1)
    def _finalize():
        # One small cross-lane reduce per partial; fold 1/count in here so the
        # wrapper only does the tiny P-way add.
        total = jnp.sum(acc_ref[...]) * inv_n
        part_ref[...] = jnp.broadcast_to(total, part_ref.shape)


def mse_loss_pallas(output, reward, *, target_block_bytes=None, num_partials=None):
    """torch.nn.MSELoss(reduction='mean')(output, reward) on TPU via Pallas."""
    assert output.shape == reward.shape, "MSELoss requires matching shapes"
    if reward.dtype != output.dtype:
        reward = reward.astype(output.dtype)

    o_flat = output.reshape(-1)
    r_flat = reward.reshape(-1)
    L = int(o_flat.shape[0])
    inv_n = 1.0 / float(L)

    itemsize = jnp.dtype(output.dtype).itemsize
    # Sublane packing: 8 rows for 4-byte dtypes, 16 for bf16, 32 for int8/fp8.
    row_align = max(8, 32 // max(1, itemsize))

    is_v7, vmem_cap = _tpu_generation()
    if target_block_bytes is None:
        # v7x HBM (~3.2 TB/s per TC) makes the fixed per-step grid overhead
        # relatively larger, so use ~4 MiB input blocks there, ~2 MiB else.
        target_block_bytes = (4 << 20) if is_v7 else (2 << 20)
    if num_partials is None:
        # Only v7x has 2 TensorCores worth sharding the reduction across.
        num_partials = 2 if is_v7 else 1

    # Lane-dense flattened slab: (rows, 128). Handles any feature dim / rank
    # with zero wasted lanes (narrow N, N % 128 != 0, very wide N).
    rows = _cdiv(L, LANES)

    rows_target = target_block_bytes // (LANES * itemsize)
    rows_target = max(row_align, (rows_target // row_align) * row_align)
    tile_rows = min(rows_target, _round_up(rows, row_align))

    # Partial split across TensorCores, only when padding waste stays small.
    total_tiles = _cdiv(rows, tile_rows)
    P = num_partials if (num_partials > 1 and total_tiles >= 4 * num_partials) else 1
    K = _cdiv(rows, P * tile_rows)            # reduction steps per partial
    rows_pad = P * K * tile_rows
    L_pad = rows_pad * LANES

    if L_pad != L:
        # Zero-pad BOTH operands: padded entries contribute (0-0)^2 = 0 to the
        # sum; the mean divides by the true element count via inv_n.
        o_flat = jnp.pad(o_flat, (0, L_pad - L))
        r_flat = jnp.pad(r_flat, (0, L_pad - L))
    o2 = o_flat.reshape(rows_pad, LANES)
    r2 = r_flat.reshape(rows_pad, LANES)

    # VMEM budget: 2 inputs x 2 pipeline buffers x block + (8,128) f32 acc
    # + P output blocks + headroom; cap at 75% of physical per-core VMEM.
    block_in_bytes = tile_rows * LANES * itemsize
    working_set = 2 * 2 * block_in_bytes + 8 * LANES * 4 + P * 8 * LANES * 4
    vmem_limit = int(min(working_set + (4 << 20), (vmem_cap * 3) // 4))

    def _in_index_map(p, k):
        return (p * K + k, 0)

    in_spec = pl.BlockSpec((tile_rows, LANES), _in_index_map)

    kernel = functools.partial(
        _mse_partial_kernel, inv_n=inv_n, sub_blocks=tile_rows // 8)

    parts = pl.pallas_call(
        kernel,
        out_shape=jax.ShapeDtypeStruct((P, 8, LANES), jnp.float32),
        grid_spec=pltpu.PrefetchScalarGridSpec(
            num_scalar_prefetch=0,
            grid=(P, K),
            in_specs=[in_spec, in_spec],
            # Lane-dense (8,128) block per partial; same block across the
            # innermost ("arbitrary") reduction axis -> written once at k==K-1.
            out_specs=pl.BlockSpec((1, 8, LANES), lambda p, k: (p, 0, 0)),
            scratch_shapes=[pltpu.VMEM((8, LANES), jnp.float32)],
        ),
        compiler_params=pltpu.CompilerParams(
            dimension_semantics=("parallel", "arbitrary"),
            vmem_limit_bytes=vmem_limit,
        ),
        cost_estimate=pl.CostEstimate(
            flops=3 * L_pad,
            transcendentals=0,
            bytes_accessed=2 * L_pad * itemsize + P * 8 * LANES * 4,
        ),
    )(o2, r2)

    # Each (8,128) output block is a splat of (partial sum) * inv_n.
    return jnp.sum(parts[:, 0, 0])


if __name__ == "__main__":
    key = jax.random.PRNGKey(0)
    k1, k2, k3, k4, k5, k6 = jax.random.split(key, 6)

    # Reward-approximation setting: batch of network outputs vs rewards.
    o1 = jax.random.normal(k1, (32, 128), dtype=jnp.float32)
    r1 = jax.random.normal(k2, (32, 128), dtype=jnp.float32)
    loss1 = jax.block_until_ready(mse_loss_pallas(o1, r1))
    ref1 = jnp.mean((o1 - r1) ** 2)
    assert jnp.allclose(loss1, ref1, rtol=1e-5, atol=1e-6), (loss1, ref1)

    # Non-multiple-of-128 feature dim exercises the lane-dense flatten + pad
    # path; small block budget forces a multi-step (K > 1) reduction.
    o2 = jax.random.normal(k3, (100, 37), dtype=jnp.float32)
    r2 = jax.random.normal(k4, (100, 37), dtype=jnp.float32)
    loss2 = jax.block_until_ready(
        mse_loss_pallas(o2, r2, target_block_bytes=8 * 128 * 4))
    ref2 = jnp.mean((o2 - r2) ** 2)
    assert jnp.allclose(loss2, ref2, rtol=1e-5, atol=1e-6), (loss2, ref2)

    # bf16 inputs exercise the 16-row sublane-packing path (f32 accumulation).
    o3 = jax.random.normal(k5, (64, 96), dtype=jnp.bfloat16)
    r3 = jax.random.normal(k6, (64, 96), dtype=jnp.bfloat16)
    loss3 = jax.block_until_ready(mse_loss_pallas(o3, r3))
    ref3 = jnp.mean((o3.astype(jnp.float32) - r3.astype(jnp.float32)) ** 2)
    assert jnp.allclose(loss3, ref3, rtol=1e-4, atol=1e-5), (loss3, ref3)

    print("KERNEL_OK")
</pallas_src>

<mosaic_0001>
module attributes {stable_mosaic.version = 11 : i64} {
  func.func @_mse_partial_kernel(%arg0: i32, %arg1: i32, %arg2: memref<32x128xf32, #tpu.memory_space<vmem>>, %arg3: memref<32x128xf32, #tpu.memory_space<vmem>>, %arg4: memref<1x8x128xf32, #tpu.memory_space<vmem>>, %arg5: memref<8x128xf32, #tpu.memory_space<vmem>>) attributes {dimension_semantics = [#tpu.dimension_semantics<parallel>, #tpu.dimension_semantics<arbitrary>], iteration_bounds = array<i64: 1, 1>, scalar_prefetch = 0 : i64, scratch_operands = 1 : i64, tpu.core_type = #tpu.core_type<tc>, window_params = [{transform_indices = @transform_0, window_bounds = array<i64: 32, 128>}, {transform_indices = @transform_1, window_bounds = array<i64: 32, 128>}, {transform_indices = @transform_2, window_bounds = array<i64: 1, 8, 128>}]} {
    %c0_i32 = arith.constant 0 : i32
    %0 = arith.cmpi eq, %arg1, %c0_i32 : i32
    %1 = arith.extui %0 : i1 to i32
    %c0_i32_0 = arith.constant 0 : i32
    %2 = arith.cmpi ne, %1, %c0_i32_0 : i32
    scf.if %2 {
      %cst_10 = arith.constant 0.000000e+00 : f32
      %15 = vector.broadcast %cst_10 : f32 to vector<8x128xf32>
      %c0_11 = arith.constant 0 : index
      %c0_12 = arith.constant 0 : index
      %16 = vector.load %arg5[%c0_11, %c0_12] : memref<8x128xf32, #tpu.memory_space<vmem>>, vector<8x128xf32>
      tpu.vector_store %arg5[%c0_11, %c0_12], %15 {strides = array<i32>} : memref<8x128xf32, #tpu.memory_space<vmem>>, vector<8x128xf32>,
    } else {
    }
    %c0 = arith.constant 0 : index
    %c0_1 = arith.constant 0 : index
    %3 = vector.load %arg2[%c0, %c0_1] : memref<32x128xf32, #tpu.memory_space<vmem>>, vector<32x128xf32>
    %c0_2 = arith.constant 0 : index
    %c0_3 = arith.constant 0 : index
    %4 = vector.load %arg3[%c0_2, %c0_3] : memref<32x128xf32, #tpu.memory_space<vmem>>, vector<32x128xf32>
    %5 = arith.subf %3, %4 : vector<32x128xf32>
    %6 = arith.mulf %5, %5 : vector<32x128xf32>
    %c0_4 = arith.constant 0 : index
    %c0_5 = arith.constant 0 : index
    %7 = vector.load %arg5[%c0_4, %c0_5] : memref<8x128xf32, #tpu.memory_space<vmem>>, vector<8x128xf32>
    %8 = vector.shape_cast %6 : vector<32x128xf32> to vector<4x8x128xf32>
    %cst = arith.constant dense<0.000000e+00> : vector<8x128xf32>
    %9 = vector.multi_reduction <add>, %8, %cst [0] : vector<4x8x128xf32> to vector<8x128xf32>
    %10 = arith.addf %7, %9 : vector<8x128xf32>
    %c0_6 = arith.constant 0 : index
    %c0_7 = arith.constant 0 : index
    %11 = vector.load %arg5[%c0_6, %c0_7] : memref<8x128xf32, #tpu.memory_space<vmem>>, vector<8x128xf32>
    tpu.vector_store %arg5[%c0_6, %c0_7], %10 {strides = array<i32>} : memref<8x128xf32, #tpu.memory_space<vmem>>, vector<8x128xf32>,
    %c0_i32_8 = arith.constant 0 : i32
    %12 = arith.cmpi eq, %arg1, %c0_i32_8 : i32
    %13 = arith.extui %12 : i1 to i32
    %c0_i32_9 = arith.constant 0 : i32
    %14 = arith.cmpi ne, %13, %c0_i32_9 : i32
    scf.if %14 {
      %c0_10 = arith.constant 0 : index
      %c0_11 = arith.constant 0 : index
      %15 = vector.load %arg5[%c0_10, %c0_11] : memref<8x128xf32, #tpu.memory_space<vmem>>, vector<8x128xf32>
      %16 = vector.shape_cast %15 : vector<8x128xf32> to vector<1x8x128xf32>
      %cst_12 = arith.constant dense<0.000000e+00> : vector<1xf32>
      %17 = vector.multi_reduction <add>, %16, %cst_12 [1, 2] : vector<1x8x128xf32> to vector<1xf32>
      %18 = vector.shape_cast %17 : vector<1xf32> to vector<1x1x1xf32>
      %19 = vector.extract %18[0, 0, 0] : f32 from vector<1x1x1xf32>
      %cst_13 = arith.constant 2.44140625E-4 : f32
      %20 = arith.mulf %19, %cst_13 : f32
      %21 = vector.broadcast %20 : f32 to vector<1x8x128xf32>
      %c0_14 = arith.constant 0 : index
      %c0_15 = arith.constant 0 : index
      %c0_16 = arith.constant 0 : index
      %22 = vector.load %arg4[%c0_14, %c0_15, %c0_16] : memref<1x8x128xf32, #tpu.memory_space<vmem>>, vector<1x8x128xf32>
      tpu.vector_store %arg4[%c0_14, %c0_15, %c0_16], %21 {strides = array<i32>} : memref<1x8x128xf32, #tpu.memory_space<vmem>>, vector<1x8x128xf32>,
    } else {
    }
    return
  }
  func.func @transform_0(%arg0: i32, %arg1: i32) -> (i32, i32) {
    %c1_i32 = arith.constant 1 : i32
    %0 = arith.muli %arg0, %c1_i32 : i32
    %1 = arith.addi %0, %arg1 : i32
    %c0_i32 = arith.constant 0 : i32
    %c0_i32_0 = arith.constant 0 : i32
    return %1, %c0_i32 : i32, i32
  }
  func.func @transform_1(%arg0: i32, %arg1: i32) -> (i32, i32) {
    %c1_i32 = arith.constant 1 : i32
    %0 = arith.muli %arg0, %c1_i32 : i32
    %1 = arith.addi %0, %arg1 : i32
    %c0_i32 = arith.constant 0 : i32
    %c0_i32_0 = arith.constant 0 : i32
    return %1, %c0_i32 : i32, i32
  }
  func.func @transform_2(%arg0: i32, %arg1: i32) -> (i32, i32, i32) {
    %c0_i32 = arith.constant 0 : i32
    %c0_i32_0 = arith.constant 0 : i32
    %c0_i32_1 = arith.constant 0 : i32
    return %arg0, %c0_i32, %c0_i32_0 : i32, i32, i32
  }
}

</mosaic_0001>

<bundles_post_ra>
// kernel: tpu_custom_call.1
= control target key start
LH: loop header
LB: loop body
LE: loop exit
PB: predicated region body
PF: predicated region fallthrough
CT: control target
= control target key end

     0   :  { %7 = vsyncpa [#allocation4], 0  ;;  %s246_s0 = inlined_call_operand.hbm [shape: f32[32,128], index: 0, kind: input, shape index: {}]   ;;  %s247_s1 = inlined_call_operand.hbm [shape: f32[32,128], index: 1, kind: input, shape index: {}]   ;;  %s248_s2 = inlined_call_operand.hbm [shape: f32[1,8,128], index: 2, kind: output, shape index: {}]  }
   0x1   :  { %8 = vsyncpa [#allocation7], 0 }
   0x2   :  { %9 = vsyncpa [#allocation5], 0  ;;  %s190_s9 = smov [#allocation3]   ;;  %s118_s13 = scalar_lea.hbm %s246_s0, 512 }
   0x3   :  { %s19_s10 = sshll.u32 %s190_s9, 4  ;;  %p119_p0 = scmp.ne.s32.totalorder %s246_s0, %s118_s13  ;;  %s20_s10 = int_to_ptr.vmem [resolvable:$true] %s19_s10 }
   0x4   :  { %p122_p1 = scmp.lt.u32.totalorder %s118_s13, %s246_s0 }
   0x6   :  { %p124_p2 = pnand %p122_p1, %p119_p0 }
   0x8   :  { %127 = shalt.err (!%p124_p2)
}
   0x9   :  { %s128_s18 = scalar_lea.vmem %s20_s10, 512  ;;  %p133_p4 = scmp.lt.s32.totalorder %s20_s10, %s20_s10 }
   0xa   :  { %p129_p3 = scmp.ne.s32.totalorder %s20_s10, %s128_s18  ;;  %p134_p5 = scmp.lt.s32.totalorder %s128_s18, %s128_s18 }
   0xc   :  { %p135_p6 = por %p134_p5, %p133_p4 }
   0xe   :  { %p136_p7 = pnand %p135_p6, %p129_p3 }
  0x10   :  { %139 = shalt.err (!%p136_p7)
}
  0x11   :  { %s191_s19 = smov 128   ;;  %s192_s20 = smov 8  }
  0x12   :  { %25 = dma.hbm_to_vmem [thread:$0]  %s246_s0, 512, %s20_s10, [#allocation4], %s191_s19, %s191_s19, %s192_s20  }
  0x13   :  { %s193_s23 = smov [#allocation6]   ;;  %s140_s27 = scalar_lea.hbm %s247_s1, 512 }
  0x14   :  { %s35_s24 = sshll.u32 %s193_s23, 4  ;;  %p141_p8 = scmp.ne.s32.totalorder %s247_s1, %s140_s27  ;;  %s36_s24 = int_to_ptr.vmem [resolvable:$true] %s35_s24 }
  0x15   :  { %p144_p9 = scmp.lt.u32.totalorder %s140_s27, %s247_s1 }
  0x17   :  { %p146_p10 = pnand %p144_p9, %p141_p8 }
  0x19   :  { %149 = shalt.err (!%p146_p10)
}
  0x1a   :  { %s150_s4 = scalar_lea.vmem %s36_s24, 512  ;;  %p155_p12 = scmp.lt.s32.totalorder %s36_s24, %s36_s24 }
  0x1b   :  { %p151_p11 = scmp.ne.s32.totalorder %s36_s24, %s150_s4  ;;  %p156_p13 = scmp.lt.s32.totalorder %s150_s4, %s150_s4 }
  0x1d   :  { %p157_p0 = por %p156_p13, %p155_p12 }
  0x1f   :  { %p158_p1 = pnand %p157_p0, %p151_p11 }
  0x21   :  { %161 = shalt.err (!%p158_p1)
}
  0x22   :  { %41 = dma.hbm_to_vmem [thread:$0]  %s247_s1, 512, %s36_s24, [#allocation7], %s191_s19, %s191_s19, %s192_s20  }
  0x23   :  { %184 = dma.done.wait [#allocation4], 512  }
  0x24   :  { %185 = vsyncadd [#allocation4], 4294966784 }
  0x25   :  { %186 = dma.done.wait [#allocation7], 512  }
  0x26   :  { %187 = vsyncadd [#allocation7], 4294966784  ;;  %v57_v0 = vld [vmem:[#allocation3] sm:$0xff]  ;;  %v58_v1 = vld [vmem:[#allocation3 + $0x8] sm:$0xff]  ;;  %s194_s1 = smov [#allocation8]  }
  0x27   :  { %v59_v2 = vld [vmem:[#allocation3 + $0x10] sm:$0xff]  ;;  %v60_v3 = vld [vmem:[#allocation3 + $0x18] sm:$0xff]  ;;  %v61_v4 = vld [vmem:[#allocation6] sm:$0xff]  ;;  %s101_s6 = sshll.u32 %s194_s1, 4  ;;  %s102_s6 = int_to_ptr.vmem [resolvable:$true] %s101_s6 }
  0x28   :  { %v62_v5 = vld [vmem:[#allocation6 + $0x8] sm:$0xff]  ;;  %v63_v6 = vld [vmem:[#allocation6 + $0x10] sm:$0xff]  ;;  %v64_v7 = vld [vmem:[#allocation6 + $0x18] sm:$0xff]  ;;  %v65_v8 = vsub.f32 %v57_v0, %v61_v4  ;;  %s162_s9 = scalar_lea.vmem %s102_s6, 128  ;;  %p167_p3 = scmp.lt.s32.totalorder %s102_s6, %s102_s6 }
  0x29   :  { %v66_v9 = vsub.f32 %v58_v1, %v62_v5  ;;  %v67_v10 = vsub.f32 %v59_v2, %v63_v6  ;;  %v68_v11 = vsub.f32 %v60_v3, %v64_v7  ;;  %p163_p2 = scmp.ne.s32.totalorder %s102_s6, %s162_s9  ;;  %p168_p4 = scmp.lt.s32.totalorder %s162_s9, %s162_s9 }
  0x2a   :  { %v69_v12 = vmul.f32 %v65_v8, %v65_v8 }
  0x2b   :  { %v70_v13 = vmul.f32 %v66_v9, %v66_v9  ;;  %v71_v14 = vmul.f32 %v67_v10, %v67_v10  ;;  %v72_v15 = vmul.f32 %v68_v11, %v68_v11  ;;  %p169_p5 = por %p168_p4, %p167_p3 }
  0x2d   :  { %v74_v16 = vadd.f32 %v70_v13, %v69_v12  ;;  %p170_p6 = pnand %p169_p5, %p163_p2 }
  0x2f   :  { %v75_v17 = vadd.f32 %v74_v16, %v71_v14 }
  0x31   :  { %v76_v18 = vadd.f32 %v75_v17, %v72_v15 }
  0x33   :  { %83 = vadd.xlane.f32.xlu0 %v76_v18 }
  0xc0   :  { %v84_v19 = vpop.xlane.xlu0 %83 }
  0xc1   :  { %v85_v20 = vrot.slane %v84_v19, 4 }
  0xc3   :  { %v86_v21 = vadd.f32 %v85_v20, %v84_v19 }
  0xc5   :  { %v87_v22 = vrot.slane %v86_v21, 2 }
  0xc7   :  { %v88_v23 = vadd.f32 %v87_v22, %v86_v21 }
  0xc9   :  { %v89_v24 = vrot.slane %v88_v23, 1 }
  0xcb   :  { %v90_v25 = vadd.f32 %v89_v24, %v88_v23 }
  0xcd   :  { %111 = vpush %v90_v25 }
  0xfe   :  { %s112_s7 = spop %111 }
  0xff   :  { %s92_s8 = smul.f32 0.00024414063, %s112_s7 }
 0x101   :  { %v93_v26 = vstv %s92_s8 }
 0x102   :  { %94 = vst [vmem:[#allocation8] sm:$0xff] %v93_v26 }
 0x103   :  { %173 = shalt.err (!%p170_p6)
}
 0x104   :  { %s174_s12 = scalar_lea.hbm %s248_s2, 128 }
 0x105   :  { %p175_p7 = scmp.ne.s32.totalorder %s248_s2, %s174_s12  ;;  %p178_p8 = scmp.lt.u32.totalorder %s174_s12, %s248_s2 }
 0x107   :  { %p180_p9 = pnand %p178_p8, %p175_p7 }
 0x109   :  { %183 = shalt.err (!%p180_p9)
}
 0x10a   :  { %104 = dma.vmem_to_hbm [thread:$0]  %s102_s6, 128, %s248_s2, [#allocation5]  }
 0x10b   :  { %188 = dma.done.wait [#allocation5], 128  }
 0x10c   :  { %189 = vsyncadd [#allocation5], 4294967168 }
 0x10d   :  { %108 = vsyncpa [#allocation4], 1 }
 0x10e   :  { %109 = vsyncpa [#allocation7], 1 }
 0x10f   :  { %110 = vsyncpa [#allocation5], 1 }

</bundles_post_ra>
